<compile_context>
chip_gen: v5e
topology: v5e:2x2
jax: 0.10.0
libtpu: 0.0.40
codegen_flags: <defaults>
</compile_context>

<pallas_src>
import jax
import jax.numpy as jnp
import numpy as np
from jax.experimental import pallas as pl
from jax.experimental.pallas import tpu as pltpu


def _round_up(x, m):
    return (x + m - 1) // m * m


# ---------------------------------------------------------------------------
# Kernel 1: hoisted input projection  gx = x @ W_ih^T + (b_ih + b_hh)
# ---------------------------------------------------------------------------
def _input_proj_kernel(x_ref, w_ref, b_ref, gx_ref):
    gx_ref[...] = (
        jnp.dot(x_ref[...], w_ref[...], preferred_element_type=jnp.float32)
        + b_ref[...]
    )


def input_projection_pallas(x_flat, w_ih_t, bias, rows_per_block):
    R, E = x_flat.shape
    G = w_ih_t.shape[1]
    assert R % rows_per_block == 0
    grid = (R // rows_per_block,)
    return pl.pallas_call(
        _input_proj_kernel,
        out_shape=jax.ShapeDtypeStruct((R, G), jnp.float32),
        grid_spec=pltpu.PrefetchScalarGridSpec(
            num_scalar_prefetch=0,
            grid=grid,
            in_specs=[
                pl.BlockSpec((rows_per_block, E), lambda i: (i, 0)),  # x rows
                pl.BlockSpec((E, G), lambda i: (0, 0)),               # W_ih^T
                pl.BlockSpec((1, G), lambda i: (0, 0)),               # bias
            ],
            out_specs=pl.BlockSpec((rows_per_block, G), lambda i: (i, 0)),
        ),
        compiler_params=pltpu.CompilerParams(
            dimension_semantics=("parallel",)),
    )(x_flat, w_ih_t, bias)


# ---------------------------------------------------------------------------
# Kernel 2: serial LSTM recurrence over time chunks
# ---------------------------------------------------------------------------
def _lstm_recurrent_kernel(len_ref, gx_ref, whh_ref, out_ref, hn_ref, cn_ref):
    chunk = pl.program_id(0)
    Tc, Bp, _ = gx_ref.shape
    Hp = hn_ref.shape[-1]

    @pl.when(chunk == 0)
    def _():
        hn_ref[...] = jnp.zeros_like(hn_ref)
        cn_ref[...] = jnp.zeros_like(cn_ref)

    lengths = len_ref[...]                       # [Bp, 1] int32
    zeros_h = jnp.zeros((Bp, Hp), jnp.float32)   # hoisted (no per-step zeros)
    t_base = chunk * Tc

    h = hn_ref[...]                              # [Bp, Hp] f32 carry
    c = cn_ref[...]                              # [Bp, Hp] f32 carry
    # Fully unrolled time loop over this chunk (static trip count Tc):
    # equivalent to lax.fori_loop(..., unroll=True) but all indices static.
    for i in range(Tc):
        gates = gx_ref[i] + jnp.dot(
            h.astype(whh_ref.dtype), whh_ref[...],
            preferred_element_type=jnp.float32)              # [Bp, 4*Hp] f32
        # gate-major layout: each slice is a lane-aligned whole-vreg view
        i_g = jax.nn.sigmoid(gates[:, 0 * Hp:1 * Hp])
        f_g = jax.nn.sigmoid(gates[:, 1 * Hp:2 * Hp])
        g_g = jnp.tanh(gates[:, 2 * Hp:3 * Hp])
        o_g = jax.nn.sigmoid(gates[:, 3 * Hp:4 * Hp])
        c_new = f_g * c + i_g * g_g
        h_new = o_g * jnp.tanh(c_new)
        # packed-sequence semantics: only advance state while t < lengths[b]
        mask = (t_base + i) < lengths                        # [Bp, 1] bool
        out_ref[i] = jnp.where(mask, h_new, zeros_h)
        h = jnp.where(mask, h_new, h)
        c = jnp.where(mask, c_new, c)
    hn_ref[...] = h
    cn_ref[...] = c


def lstm_recurrent_pallas(lengths_col, gx, w_hh_t, time_chunk):
    Tp, Bp, G = gx.shape
    Hp = G // 4
    assert Tp % time_chunk == 0
    grid = (Tp // time_chunk,)
    out_shape = (
        jax.ShapeDtypeStruct((Tp, Bp, Hp), jnp.float32),   # padded outputs
        jax.ShapeDtypeStruct((Bp, Hp), jnp.float32),       # hn
        jax.ShapeDtypeStruct((Bp, Hp), jnp.float32),       # cn
    )
    grid_spec = pltpu.PrefetchScalarGridSpec(
        num_scalar_prefetch=0,
        grid=grid,
        in_specs=[
            pl.BlockSpec((Bp, 1), lambda c: (0, 0)),                 # lengths
            pl.BlockSpec((time_chunk, Bp, G), lambda c: (c, 0, 0)),  # gx chunk
            pl.BlockSpec((Hp, G), lambda c: (0, 0)),                 # W_hh^T
        ],
        out_specs=(
            pl.BlockSpec((time_chunk, Bp, Hp), lambda c: (c, 0, 0)),  # out
            pl.BlockSpec((Bp, Hp), lambda c: (0, 0)),                 # hn carry
            pl.BlockSpec((Bp, Hp), lambda c: (0, 0)),                 # cn carry
        ),
    )
    return pl.pallas_call(
        _lstm_recurrent_kernel,
        out_shape=out_shape,
        grid_spec=grid_spec,
        compiler_params=pltpu.CompilerParams(
            dimension_semantics=("arbitrary",)),
    )(lengths_col, gx, w_hh_t)


# ---------------------------------------------------------------------------
# Parameters / wrapper (PyTorch batch_first convention in, batch_first out)
# ---------------------------------------------------------------------------
def init_params(key, vocab_size, hidden_size, embedding_dim):
    k1, k2, k3, k4, k5 = jax.random.split(key, 5)
    emb = jax.random.normal(k1, (vocab_size, embedding_dim), jnp.float32)
    emb = emb.at[0].set(0.0)                                # padding_idx=0
    s = 1.0 / np.sqrt(hidden_size)
    w_ih = jax.random.uniform(k2, (4 * hidden_size, embedding_dim), jnp.float32, -s, s)
    w_hh = jax.random.uniform(k3, (4 * hidden_size, hidden_size), jnp.float32, -s, s)
    b_ih = jax.random.uniform(k4, (4 * hidden_size,), jnp.float32, -s, s)
    b_hh = jax.random.uniform(k5, (4 * hidden_size,), jnp.float32, -s, s)
    return {"embedding": emb, "w_ih": w_ih, "w_hh": w_hh, "b_ih": b_ih, "b_hh": b_hh}


def encoder_forward(params, x, lengths, *, time_chunk=32,
                    matmul_dtype=jnp.bfloat16):
    """x: [B, T_in] int32 token ids, lengths: [B] int32 (concrete, unsorted ok)."""
    lengths_np = np.asarray(lengths)
    max_len = int(lengths_np.max())           # pad_packed_sequence trims here
    x = x[:, :max_len]
    B, T = x.shape
    E = params["embedding"].shape[1]
    H = params["w_hh"].shape[1]

    Bp = _round_up(B, 8)                      # f32 sublane alignment
    Hp = _round_up(H, 128)                    # lane alignment (vreg-wide gates)
    Tc = time_chunk
    Tp = _round_up(T, Tc)
    G = 4 * Hp

    # --- embedding gather + time-major layout + padding (plain-JAX glue) ---
    x_embed = jnp.take(params["embedding"], x, axis=0)       # [B, T, E]
    x_tm = jnp.transpose(x_embed, (1, 0, 2))                 # [T, B, E]
    x_tm = jnp.pad(x_tm, ((0, Tp - T), (0, Bp - B), (0, 0)))
    x_flat = x_tm.reshape(Tp * Bp, E).astype(matmul_dtype)

    # gate-major, lane-aligned weight layout: [*, 4*Hp], gate order i, f, g, o
    w_ih4 = params["w_ih"].reshape(4, H, E)
    w_hh4 = params["w_hh"].reshape(4, H, H)
    b4 = (params["b_ih"] + params["b_hh"]).reshape(4, H)

    w_ih_p = jnp.zeros((4, Hp, E), jnp.float32).at[:, :H, :].set(w_ih4)
    w_hh_p = jnp.zeros((4, Hp, Hp), jnp.float32).at[:, :H, :H].set(w_hh4)
    b_p = jnp.zeros((4, Hp), jnp.float32).at[:, :H].set(b4)

    w_ih_t = jnp.transpose(w_ih_p, (2, 0, 1)).reshape(E, G).astype(matmul_dtype)
    w_hh_t = jnp.transpose(w_hh_p, (2, 0, 1)).reshape(Hp, G).astype(matmul_dtype)
    bias = b_p.reshape(1, G)

    lengths_col = (jnp.zeros((Bp,), jnp.int32)
                   .at[:B].set(jnp.asarray(lengths_np, jnp.int32))
                   .reshape(Bp, 1))

    # --- kernel 1: one big parallel GEMM for all timesteps -----------------
    gx = input_projection_pallas(x_flat, w_ih_t, bias, rows_per_block=Tc * Bp)
    gx = gx.reshape(Tp, Bp, G)

    # --- kernel 2: serial recurrence over time chunks ----------------------
    out_tm, hn_p, cn_p = lstm_recurrent_pallas(lengths_col, gx, w_hh_t, Tc)

    out = jnp.transpose(out_tm[:T, :B, :H], (1, 0, 2))       # [B, T, H]
    hn = hn_p[:B, :H]
    cn = cn_p[:B, :H]
    return out, (hn[None, ...], cn[None, ...])               # [1, B, H] each


# ---------------------------------------------------------------------------
# Pure numpy reference of packed-LSTM forward (PyTorch semantics)
# ---------------------------------------------------------------------------
def reference_forward(params, x, lengths):
    x = np.asarray(x)
    lengths = np.asarray(lengths)
    emb = np.asarray(params["embedding"])
    w_ih = np.asarray(params["w_ih"])
    w_hh = np.asarray(params["w_hh"])
    bias = np.asarray(params["b_ih"]) + np.asarray(params["b_hh"])
    B = x.shape[0]
    T = int(lengths.max())
    H = w_hh.shape[1]

    def sigmoid(z):
        return 1.0 / (1.0 + np.exp(-z))

    out = np.zeros((B, T, H), np.float32)
    hn = np.zeros((B, H), np.float32)
    cn = np.zeros((B, H), np.float32)
    for b in range(B):
        h = np.zeros(H, np.float32)
        c = np.zeros(H, np.float32)
        for t in range(int(lengths[b])):
            x_t = emb[x[b, t]]
            gates = w_ih @ x_t + w_hh @ h + bias
            i = sigmoid(gates[0:H])
            f = sigmoid(gates[H:2 * H])
            g = np.tanh(gates[2 * H:3 * H])
            o = sigmoid(gates[3 * H:4 * H])
            c = f * c + i * g
            h = o * np.tanh(c)
            out[b, t] = h
        hn[b] = h
        cn[b] = c
    return out, hn, cn


if __name__ == "__main__":
    vocab_size, hidden_size, embedding_dim = 32, 32, 16
    B, T_in = 4, 10

    key = jax.random.PRNGKey(0)
    pkey, xkey = jax.random.split(key)
    params = init_params(pkey, vocab_size, hidden_size, embedding_dim)

    lengths = np.array([7, 10, 3, 5], dtype=np.int32)     # unsorted (enforce_sorted=False)
    tokens = np.array(jax.random.randint(xkey, (B, T_in), 1, vocab_size, dtype=jnp.int32))
    for b in range(B):
        tokens[b, lengths[b]:] = 0                        # pad with padding_idx=0
    x = jnp.asarray(tokens)

    out_ref_np, hn_ref_np, cn_ref_np = reference_forward(params, tokens, lengths)

    # 1) f32-matmul path: strict semantic check against the numpy reference.
    out32, (hn32, cn32) = encoder_forward(params, x, lengths,
                                          matmul_dtype=jnp.float32)
    out32, hn32, cn32 = jax.block_until_ready((out32, hn32, cn32))
    assert out32.shape == (B, int(lengths.max()), hidden_size)
    assert hn32.shape == (1, B, hidden_size) and cn32.shape == (1, B, hidden_size)
    assert np.allclose(np.asarray(out32), out_ref_np, atol=1e-4, rtol=1e-4)
    assert np.allclose(np.asarray(hn32[0]), hn_ref_np, atol=1e-4, rtol=1e-4)
    assert np.allclose(np.asarray(cn32[0]), cn_ref_np, atol=1e-4, rtol=1e-4)

    # 2) default bf16-matmul path (performance config): loose tolerance.
    out16, (hn16, cn16) = encoder_forward(params, x, lengths)
    out16, hn16, cn16 = jax.block_until_ready((out16, hn16, cn16))
    assert out16.shape == (B, int(lengths.max()), hidden_size)
    assert np.allclose(np.asarray(out16), out_ref_np, atol=1e-1, rtol=1e-1)
    assert np.allclose(np.asarray(hn16[0]), hn_ref_np, atol=1e-1, rtol=1e-1)
    assert np.allclose(np.asarray(cn16[0]), cn_ref_np, atol=1e-1, rtol=1e-1)

    print("KERNEL_OK")
</pallas_src>

<mosaic_0001>
module attributes {stable_mosaic.version = 11 : i64} {
  func.func @_input_proj_kernel(%arg0: i32, %arg1: memref<256x16xf32, #tpu.memory_space<vmem>>, %arg2: memref<16x512xf32, #tpu.memory_space<vmem>>, %arg3: memref<1x512xf32, #tpu.memory_space<vmem>>, %arg4: memref<256x512xf32, #tpu.memory_space<vmem>>) attributes {dimension_semantics = [#tpu.dimension_semantics<parallel>], iteration_bounds = array<i64: 1>, scalar_prefetch = 0 : i64, scratch_operands = 0 : i64, tpu.core_type = #tpu.core_type<tc>, window_params = [{transform_indices = @transform_0, window_bounds = array<i64: 256, 16>}, {pipeline_mode = #tpu.pipeline_mode<synchronous>, transform_indices = @transform_1, window_bounds = array<i64: 16, 512>}, {pipeline_mode = #tpu.pipeline_mode<synchronous>, transform_indices = @transform_2, window_bounds = array<i64: 1, 512>}, {transform_indices = @transform_3, window_bounds = array<i64: 256, 512>}]} {
    %c0 = arith.constant 0 : index
    %c0_0 = arith.constant 0 : index
    %0 = vector.load %arg1[%c0, %c0_0] : memref<256x16xf32, #tpu.memory_space<vmem>>, vector<256x16xf32>
    %c0_1 = arith.constant 0 : index
    %c0_2 = arith.constant 0 : index
    %1 = vector.load %arg2[%c0_1, %c0_2] : memref<16x512xf32, #tpu.memory_space<vmem>>, vector<16x512xf32>
    %cst = arith.constant dense<0.000000e+00> : vector<256x512xf32>
    %2 = tpu.matmul %0, %1, %cst {dimension_numbers = #tpu.dot_dimension_numbers<[1], [0], [0], [1], [0, 0, 1, 1], [], []>} : vector<256x16xf32>, vector<16x512xf32>, vector<256x512xf32> -> vector<256x512xf32>
    %c0_3 = arith.constant 0 : index
    %c0_4 = arith.constant 0 : index
    %3 = vector.load %arg3[%c0_3, %c0_4] : memref<1x512xf32, #tpu.memory_space<vmem>>, vector<1x512xf32>
    %4 = vector.broadcast %3 : vector<1x512xf32> to vector<256x512xf32>
    %5 = arith.addf %2, %4 : vector<256x512xf32>
    %c0_5 = arith.constant 0 : index
    %c0_6 = arith.constant 0 : index
    %6 = vector.load %arg4[%c0_5, %c0_6] : memref<256x512xf32, #tpu.memory_space<vmem>>, vector<256x512xf32>
    tpu.vector_store %arg4[%c0_5, %c0_6], %5 {strides = array<i32>} : memref<256x512xf32, #tpu.memory_space<vmem>>, vector<256x512xf32>,
    return
  }
  func.func @transform_0(%arg0: i32) -> (i32, i32) {
    %c0_i32 = arith.constant 0 : i32
    %c0_i32_0 = arith.constant 0 : i32
    return %arg0, %c0_i32 : i32, i32
  }
  func.func @transform_1(%arg0: i32) -> (i32, i32) {
    %c0_i32 = arith.constant 0 : i32
    %c0_i32_0 = arith.constant 0 : i32
    %c0_i32_1 = arith.constant 0 : i32
    return %c0_i32, %c0_i32_0 : i32, i32
  }
  func.func @transform_2(%arg0: i32) -> (i32, i32) {
    %c0_i32 = arith.constant 0 : i32
    %c0_i32_0 = arith.constant 0 : i32
    %c0_i32_1 = arith.constant 0 : i32
    return %c0_i32, %c0_i32_0 : i32, i32
  }
  func.func @transform_3(%arg0: i32) -> (i32, i32) {
    %c0_i32 = arith.constant 0 : i32
    %c0_i32_0 = arith.constant 0 : i32
    return %arg0, %c0_i32 : i32, i32
  }
}

</mosaic_0001>

<bundles_post_ra>
// kernel: tpu_custom_call.1
= control target key start
LH: loop header
LB: loop body
LE: loop exit
PB: predicated region body
PF: predicated region fallthrough
CT: control target
= control target key end

     0   :  { %vm65_vm0 = vcmask 130048   ;;  %s1330_s0 = inlined_call_operand.vmem [shape: f32[256,16], index: 0, kind: input, shape index: {}]   ;;  %s1331_s1 = inlined_call_operand.vmem [shape: f32[16,512], index: 1, kind: input, shape index: {}]   ;;  %s1332_s2 = inlined_call_operand.vmem [shape: f32[1,512], index: 2, kind: input, shape index: {}]   ;;  %s1333_s3 = inlined_call_operand.hbm [shape: f32[256,512], index: 3, kind: output, shape index: {}]  }
   0x1   :  { %v53_v0 = vld [vmem:[%s1331_s1 + $0x30] sm:$0xff]  ;;  %v54_v1 = vld [vmem:[%s1331_s1 + $0x38] sm:$0xff]  ;;  %v15_v4 = vld [vmem:[%s1330_s0] sm:$0xff] }
   0x2   :  { %v49_v2 = vld [vmem:[%s1331_s1 + $0x10] sm:$0xff]  ;;  %402 = vmatpush.msra.mxu2 %v53_v0  ;;  %515 = vmatpush.msra.mxu3 %v54_v1  ;;  %v50_v3 = vld [vmem:[%s1331_s1 + $0x18] sm:$0xff]  ;;  %v51_v5 = vld [vmem:[%s1331_s1 + $0x20] sm:$0xff] }
   0x3   :  { %176 = vmatpush.msra.mxu0 %v51_v5  ;;  %v52_v6 = vld [vmem:[%s1331_s1 + $0x28] sm:$0xff]  ;;  %v47_v7 = vld [vmem:[%s1331_s1] sm:$0xff] }
   0x4   :  { %403 = vmatpush.msra.mxu2 %v49_v2  ;;  %516 = vmatpush.msra.mxu3 %v50_v3  ;;  %v48_v8 = vld [vmem:[%s1331_s1 + $0x8] sm:$0xff] }
   0x5   :  { %824 = vmatmul.msk.f32.vlgmr.msra.gmra.mxu2 %vm65_vm0, %v15_v4  ;;  %856 = vmatmul.msk.f32.vlgmr.msra.gmra.mxu3 %vm65_vm0, %v15_v4 }
   0x6   :  { %8 = vsyncpa [#allocation3], 0  ;;  %289 = vmatpush.msra.mxu1 %v52_v6  ;;  %177 = vmatpush.msra.mxu0 %v47_v7  ;;  %v16_v9 = vld [vmem:[%s1330_s0 + $0x8] sm:$0xff]  ;;  %v17_v10 = vld [vmem:[%s1330_s0 + $0x10] sm:$0xff]  ;;  %s748_s11 = sshll.u32 %s1333_s3, 4  ;;  %s918_s12 = smov 512   ;;  %s749_s11 = int_to_ptr.hbm [resolvable:$true] %s748_s11 }
   0x7   :  { %760 = vmatmul.msk.f32.vlgmr.msra.gmra.mxu0 %vm65_vm0, %v15_v4  ;;  %v18_v11 = vld [vmem:[%s1330_s0 + $0x18] sm:$0xff]  ;;  %v19_v12 = vld [vmem:[%s1330_s0 + $0x20] sm:$0xff]  ;;  %v20_v13 = vld [vmem:[%s1330_s0 + $0x28] sm:$0xff]  ;;  %s919_s13 = smov 32  }
   0x8   :  { %290 = vmatpush.msra.mxu1 %v48_v8  ;;  %v21_v14 = vld [vmem:[%s1330_s0 + $0x30] sm:$0xff]  ;;  %v22_v15 = vld [vmem:[%s1330_s0 + $0x38] sm:$0xff]  ;;  %v23_v16 = vld [vmem:[%s1330_s0 + $0x40] sm:$0xff] }
   0x9   :  { %792 = vmatmul.msk.f32.vlgmr.msra.gmra.mxu1 %vm65_vm0, %v15_v4  ;;  %v24_v17 = vld [vmem:[%s1330_s0 + $0x48] sm:$0xff]  ;;  %v25_v18 = vld [vmem:[%s1330_s0 + $0x50] sm:$0xff]  ;;  %v26_v19 = vld [vmem:[%s1330_s0 + $0x58] sm:$0xff] }
   0xa   :  { %v27_v20 = vld [vmem:[%s1330_s0 + $0x60] sm:$0xff]  ;;  %v28_v21 = vld [vmem:[%s1330_s0 + $0x68] sm:$0xff]  ;;  %v29_v22 = vld [vmem:[%s1330_s0 + $0x70] sm:$0xff] }
   0xb   :  { %v30_v23 = vld [vmem:[%s1330_s0 + $0x78] sm:$0xff]  ;;  %v55_v24 = vld [vmem:[%s1332_s2] sm:$0xf]  ;;  %v32_v38 = vld [vmem:[%s1330_s0 + $0x88] sm:$0xff] }
   0xc   :  { %v1079_v25 = vperm.slane %v55_v24, 0  ;;  %v31_v26 = vld [vmem:[%s1330_s0 + $0x80] sm:$0xff]  ;;  %v1084_v27 = vperm.slane %v55_v24, 1  ;;  %v1089_v30 = vperm.slane %v55_v24, 2  ;;  %v1091_v31 = vperm.slane %v55_v24, 3  ;;  %v33_v47 = vld [vmem:[%s1330_s0 + $0x90] sm:$0xff] }
   0xd   :  { %825 = vmatmul.msk.f32.gmra.mxu2 %vm65_vm0, %v16_v9  ;;  %857 = vmatmul.msk.f32.gmra.mxu3 %vm65_vm0, %v16_v9  ;;  %v34_v56 = vld [vmem:[%s1330_s0 + $0x98] sm:$0xff]  ;;  %v35_v1 = vld [vmem:[%s1330_s0 + $0xa0] sm:$0xff] }
   0xf   :  { %761 = vmatmul.msk.f32.gmra.mxu0 %vm65_vm0, %v16_v9 }
  0x11   :  { %793 = vmatmul.msk.f32.gmra.mxu1 %vm65_vm0, %v16_v9 }
  0x15   :  { %826 = vmatmul.msk.f32.gmra.mxu2 %vm65_vm0, %v17_v10  ;;  %858 = vmatmul.msk.f32.gmra.mxu3 %vm65_vm0, %v17_v10 }
  0x17   :  { %762 = vmatmul.msk.f32.gmra.mxu0 %vm65_vm0, %v17_v10 }
  0x19   :  { %794 = vmatmul.msk.f32.gmra.mxu1 %vm65_vm0, %v17_v10  ;;  %v36_v10 = vld [vmem:[%s1330_s0 + $0xa8] sm:$0xff] }
  0x1d   :  { %827 = vmatmul.msk.f32.gmra.mxu2 %vm65_vm0, %v18_v11  ;;  %859 = vmatmul.msk.f32.gmra.mxu3 %vm65_vm0, %v18_v11 }
  0x1f   :  { %763 = vmatmul.msk.f32.gmra.mxu0 %vm65_vm0, %v18_v11 }
  0x21   :  { %795 = vmatmul.msk.f32.gmra.mxu1 %vm65_vm0, %v18_v11 }
  0x25   :  { %828 = vmatmul.msk.f32.gmra.mxu2 %vm65_vm0, %v19_v12  ;;  %860 = vmatmul.msk.f32.gmra.mxu3 %vm65_vm0, %v19_v12 }
  0x27   :  { %764 = vmatmul.msk.f32.gmra.mxu0 %vm65_vm0, %v19_v12 }
  0x29   :  { %796 = vmatmul.msk.f32.gmra.mxu1 %vm65_vm0, %v19_v12 }
  0x2d   :  { %829 = vmatmul.msk.f32.gmra.mxu2 %vm65_vm0, %v20_v13  ;;  %861 = vmatmul.msk.f32.gmra.mxu3 %vm65_vm0, %v20_v13 }
  0x2f   :  { %765 = vmatmul.msk.f32.gmra.mxu0 %vm65_vm0, %v20_v13 }
  0x31   :  { %797 = vmatmul.msk.f32.gmra.mxu1 %vm65_vm0, %v20_v13 }
  0x35   :  { %830 = vmatmul.msk.f32.gmra.mxu2 %vm65_vm0, %v21_v14  ;;  %862 = vmatmul.msk.f32.gmra.mxu3 %vm65_vm0, %v21_v14 }
  0x37   :  { %766 = vmatmul.msk.f32.gmra.mxu0 %vm65_vm0, %v21_v14 }
  0x39   :  { %798 = vmatmul.msk.f32.gmra.mxu1 %vm65_vm0, %v21_v14 }
  0x3d   :  { %831 = vmatmul.msk.f32.gmra.mxu2 %vm65_vm0, %v22_v15  ;;  %863 = vmatmul.msk.f32.gmra.mxu3 %vm65_vm0, %v22_v15 }
  0x3f   :  { %767 = vmatmul.msk.f32.gmra.mxu0 %vm65_vm0, %v22_v15 }
  0x41   :  { %799 = vmatmul.msk.f32.gmra.mxu1 %vm65_vm0, %v22_v15 }
  0x45   :  { %832 = vmatmul.msk.f32.gmra.mxu2 %vm65_vm0, %v23_v16  ;;  %864 = vmatmul.msk.f32.gmra.mxu3 %vm65_vm0, %v23_v16 }
  0x47   :  { %768 = vmatmul.msk.f32.gmra.mxu0 %vm65_vm0, %v23_v16 }
  0x49   :  { %800 = vmatmul.msk.f32.gmra.mxu1 %vm65_vm0, %v23_v16 }
  0x4d   :  { %833 = vmatmul.msk.f32.gmra.mxu2 %vm65_vm0, %v24_v17  ;;  %865 = vmatmul.msk.f32.gmra.mxu3 %vm65_vm0, %v24_v17 }
  0x4f   :  { %769 = vmatmul.msk.f32.gmra.mxu0 %vm65_vm0, %v24_v17 }
  0x51   :  { %801 = vmatmul.msk.f32.gmra.mxu1 %vm65_vm0, %v24_v17 }
  0x55   :  { %834 = vmatmul.msk.f32.gmra.mxu2 %vm65_vm0, %v25_v18  ;;  %866 = vmatmul.msk.f32.gmra.mxu3 %vm65_vm0, %v25_v18 }
  0x57   :  { %770 = vmatmul.msk.f32.gmra.mxu0 %vm65_vm0, %v25_v18 }
  0x59   :  { %802 = vmatmul.msk.f32.gmra.mxu1 %vm65_vm0, %v25_v18 }
  0x5d   :  { %835 = vmatmul.msk.f32.gmra.mxu2 %vm65_vm0, %v26_v19  ;;  %867 = vmatmul.msk.f32.gmra.mxu3 %vm65_vm0, %v26_v19 }
  0x5f   :  { %771 = vmatmul.msk.f32.gmra.mxu0 %vm65_vm0, %v26_v19 }
  0x61   :  { %803 = vmatmul.msk.f32.gmra.mxu1 %vm65_vm0, %v26_v19  ;;  %v37_v19 = vld [vmem:[%s1330_s0 + $0xb0] sm:$0xff] }
  0x65   :  { %836 = vmatmul.msk.f32.gmra.mxu2 %vm65_vm0, %v27_v20  ;;  %868 = vmatmul.msk.f32.gmra.mxu3 %vm65_vm0, %v27_v20 }
  0x67   :  { %772 = vmatmul.msk.f32.gmra.mxu0 %vm65_vm0, %v27_v20 }
  0x69   :  { %804 = vmatmul.msk.f32.gmra.mxu1 %vm65_vm0, %v27_v20 }
  0x6d   :  { %837 = vmatmul.msk.f32.gmra.mxu2 %vm65_vm0, %v28_v21  ;;  %869 = vmatmul.msk.f32.gmra.mxu3 %vm65_vm0, %v28_v21 }
  0x6f   :  { %773 = vmatmul.msk.f32.gmra.mxu0 %vm65_vm0, %v28_v21 }
  0x71   :  { %805 = vmatmul.msk.f32.gmra.mxu1 %vm65_vm0, %v28_v21 }
  0x75   :  { %838 = vmatmul.msk.f32.gmra.mxu2 %vm65_vm0, %v29_v22  ;;  %870 = vmatmul.msk.f32.gmra.mxu3 %vm65_vm0, %v29_v22 }
  0x77   :  { %774 = vmatmul.msk.f32.gmra.mxu0 %vm65_vm0, %v29_v22 }
  0x79   :  { %806 = vmatmul.msk.f32.gmra.mxu1 %vm65_vm0, %v29_v22 }
  0x7d   :  { %839 = vmatmul.msk.f32.gmra.mxu2 %vm65_vm0, %v30_v23  ;;  %871 = vmatmul.msk.f32.gmra.mxu3 %vm65_vm0, %v30_v23 }
  0x7f   :  { %775 = vmatmul.msk.f32.gmra.mxu0 %vm65_vm0, %v30_v23 }
  0x81   :  { %807 = vmatmul.msk.f32.gmra.mxu1 %vm65_vm0, %v30_v23 }
  0x84   :  { %v179_v28 = vpop.f32.mrf.mxu0 }
  0x85   :  { %840 = vmatmul.msk.f32.gmra.mxu2 %vm65_vm0, %v31_v26  ;;  %872 = vmatmul.msk.f32.gmra.mxu3 %vm65_vm0, %v31_v26  ;;  %v180_v29 = vadd.f32 %v179_v28, %v1079_v25 }
  0x86   :  { %v292_v32 = vpop.f32.mrf.mxu1 }
  0x87   :  { %614 = vst [vmem:[#allocation2] sm:$0xff] %v180_v29  ;;  %v293_v33 = vadd.f32 %v292_v32, %v1084_v27  ;;  %776 = vmatmul.msk.f32.gmra.mxu0 %vm65_vm0, %v31_v26  ;;  %v38_v32 = vld [vmem:[%s1330_s0 + $0xb8] sm:$0xff] }
  0x88   :  { %v405_v34 = vpop.f32.mrf.mxu2  ;;  %v518_v35 = vpop.f32.mrf.mxu3 }
  0x89   :  { %615 = vst [vmem:[#allocation2 + $0x8] sm:$0xff] %v293_v33  ;;  %v406_v36 = vadd.f32 %v405_v34, %v1089_v30  ;;  %v519_v37 = vadd.f32 %v518_v35, %v1091_v31  ;;  %808 = vmatmul.msk.f32.gmra.mxu1 %vm65_vm0, %v31_v26 }
  0x8b   :  { %616 = vst [vmem:[#allocation2 + $0x10] sm:$0xff] %v406_v36 }
  0x8c   :  { %617 = vst [vmem:[#allocation2 + $0x18] sm:$0xff] %v519_v37  ;;  %v182_v39 = vpop.f32.mrf.mxu0 }
  0x8d   :  { %841 = vmatmul.msk.f32.gmra.mxu2 %vm65_vm0, %v32_v38  ;;  %873 = vmatmul.msk.f32.gmra.mxu3 %vm65_vm0, %v32_v38  ;;  %v183_v40 = vadd.f32 %v182_v39, %v1079_v25 }
  0x8e   :  { %v295_v41 = vpop.f32.mrf.mxu1 }
  0x8f   :  { %618 = vst [vmem:[#allocation2 + $0x20] sm:$0xff] %v183_v40  ;;  %v296_v42 = vadd.f32 %v295_v41, %v1084_v27  ;;  %777 = vmatmul.msk.f32.gmra.mxu0 %vm65_vm0, %v32_v38  ;;  %v39_v41 = vld [vmem:[%s1330_s0 + $0xc0] sm:$0xff] }
  0x90   :  { %v408_v43 = vpop.f32.mrf.mxu2  ;;  %v521_v44 = vpop.f32.mrf.mxu3 }
  0x91   :  { %619 = vst [vmem:[#allocation2 + $0x28] sm:$0xff] %v296_v42  ;;  %v409_v45 = vadd.f32 %v408_v43, %v1089_v30  ;;  %v522_v46 = vadd.f32 %v521_v44, %v1091_v31  ;;  %809 = vmatmul.msk.f32.gmra.mxu1 %vm65_vm0, %v32_v38 }
  0x93   :  { %620 = vst [vmem:[#allocation2 + $0x30] sm:$0xff] %v409_v45 }
  0x94   :  { %621 = vst [vmem:[#allocation2 + $0x38] sm:$0xff] %v522_v46  ;;  %v185_v48 = vpop.f32.mrf.mxu0 }
  0x95   :  { %842 = vmatmul.msk.f32.gmra.mxu2 %vm65_vm0, %v33_v47  ;;  %874 = vmatmul.msk.f32.gmra.mxu3 %vm65_vm0, %v33_v47  ;;  %v186_v49 = vadd.f32 %v185_v48, %v1079_v25 }
  0x96   :  { %v298_v50 = vpop.f32.mrf.mxu1 }
  0x97   :  { %622 = vst [vmem:[#allocation2 + $0x40] sm:$0xff] %v186_v49  ;;  %v299_v51 = vadd.f32 %v298_v50, %v1084_v27  ;;  %778 = vmatmul.msk.f32.gmra.mxu0 %vm65_vm0, %v33_v47  ;;  %v40_v50 = vld [vmem:[%s1330_s0 + $0xc8] sm:$0xff] }
  0x98   :  { %v411_v52 = vpop.f32.mrf.mxu2  ;;  %v524_v53 = vpop.f32.mrf.mxu3 }
  0x99   :  { %623 = vst [vmem:[#allocation2 + $0x48] sm:$0xff] %v299_v51  ;;  %v412_v54 = vadd.f32 %v411_v52, %v1089_v30  ;;  %v525_v55 = vadd.f32 %v524_v53, %v1091_v31  ;;  %810 = vmatmul.msk.f32.gmra.mxu1 %vm65_vm0, %v33_v47 }
  0x9b   :  { %624 = vst [vmem:[#allocation2 + $0x50] sm:$0xff] %v412_v54 }
  0x9c   :  { %625 = vst [vmem:[#allocation2 + $0x58] sm:$0xff] %v525_v55  ;;  %v188_v57 = vpop.f32.mrf.mxu0 }
  0x9d   :  { %843 = vmatmul.msk.f32.gmra.mxu2 %vm65_vm0, %v34_v56  ;;  %875 = vmatmul.msk.f32.gmra.mxu3 %vm65_vm0, %v34_v56  ;;  %v189_v58 = vadd.f32 %v188_v57, %v1079_v25 }
  0x9e   :  { %v301_v59 = vpop.f32.mrf.mxu1 }
  0x9f   :  { %626 = vst [vmem:[#allocation2 + $0x60] sm:$0xff] %v189_v58  ;;  %v302_v60 = vadd.f32 %v301_v59, %v1084_v27  ;;  %779 = vmatmul.msk.f32.gmra.mxu0 %vm65_vm0, %v34_v56  ;;  %v41_v59 = vld [vmem:[%s1330_s0 + $0xd0] sm:$0xff] }
  0xa0   :  { %v414_v61 = vpop.f32.mrf.mxu2  ;;  %v527_v62 = vpop.f32.mrf.mxu3 }
  0xa1   :  { %627 = vst [vmem:[#allocation2 + $0x68] sm:$0xff] %v302_v60  ;;  %v415_v63 = vadd.f32 %v414_v61, %v1089_v30  ;;  %v528_v0 = vadd.f32 %v527_v62, %v1091_v31  ;;  %811 = vmatmul.msk.f32.gmra.mxu1 %vm65_vm0, %v34_v56 }
  0xa3   :  { %628 = vst [vmem:[#allocation2 + $0x70] sm:$0xff] %v415_v63 }
  0xa4   :  { %629 = vst [vmem:[#allocation2 + $0x78] sm:$0xff] %v528_v0  ;;  %v191_v2 = vpop.f32.mrf.mxu0 }
  0xa5   :  { %844 = vmatmul.msk.f32.gmra.mxu2 %vm65_vm0, %v35_v1  ;;  %876 = vmatmul.msk.f32.gmra.mxu3 %vm65_vm0, %v35_v1  ;;  %v192_v3 = vadd.f32 %v191_v2, %v1079_v25 }
  0xa6   :  { %v304_v4 = vpop.f32.mrf.mxu1 }
  0xa7   :  { %630 = vst [vmem:[#allocation2 + $0x80] sm:$0xff] %v192_v3  ;;  %v305_v5 = vadd.f32 %v304_v4, %v1084_v27  ;;  %780 = vmatmul.msk.f32.gmra.mxu0 %vm65_vm0, %v35_v1  ;;  %v42_v4 = vld [vmem:[%s1330_s0 + $0xd8] sm:$0xff] }
  0xa8   :  { %v417_v6 = vpop.f32.mrf.mxu2  ;;  %v530_v7 = vpop.f32.mrf.mxu3 }
  0xa9   :  { %631 = vst [vmem:[#allocation2 + $0x88] sm:$0xff] %v305_v5  ;;  %v418_v8 = vadd.f32 %v417_v6, %v1089_v30  ;;  %v531_v9 = vadd.f32 %v530_v7, %v1091_v31  ;;  %812 = vmatmul.msk.f32.gmra.mxu1 %vm65_vm0, %v35_v1 }
  0xab   :  { %632 = vst [vmem:[#allocation2 + $0x90] sm:$0xff] %v418_v8 }
  0xac   :  { %633 = vst [vmem:[#allocation2 + $0x98] sm:$0xff] %v531_v9  ;;  %v194_v11 = vpop.f32.mrf.mxu0 }
  0xad   :  { %845 = vmatmul.msk.f32.gmra.mxu2 %vm65_vm0, %v36_v10  ;;  %877 = vmatmul.msk.f32.gmra.mxu3 %vm65_vm0, %v36_v10  ;;  %v195_v12 = vadd.f32 %v194_v11, %v1079_v25 }
  0xae   :  { %v307_v13 = vpop.f32.mrf.mxu1 }
  0xaf   :  { %634 = vst [vmem:[#allocation2 + $0xa0] sm:$0xff] %v195_v12  ;;  %v308_v14 = vadd.f32 %v307_v13, %v1084_v27  ;;  %781 = vmatmul.msk.f32.gmra.mxu0 %vm65_vm0, %v36_v10  ;;  %v43_v13 = vld [vmem:[%s1330_s0 + $0xe0] sm:$0xff] }
  0xb0   :  { %v420_v15 = vpop.f32.mrf.mxu2  ;;  %v533_v16 = vpop.f32.mrf.mxu3 }
  0xb1   :  { %635 = vst [vmem:[#allocation2 + $0xa8] sm:$0xff] %v308_v14  ;;  %v421_v17 = vadd.f32 %v420_v15, %v1089_v30  ;;  %v534_v18 = vadd.f32 %v533_v16, %v1091_v31  ;;  %813 = vmatmul.msk.f32.gmra.mxu1 %vm65_vm0, %v36_v10 }
  0xb3   :  { %636 = vst [vmem:[#allocation2 + $0xb0] sm:$0xff] %v421_v17 }
  0xb4   :  { %637 = vst [vmem:[#allocation2 + $0xb8] sm:$0xff] %v534_v18  ;;  %v197_v20 = vpop.f32.mrf.mxu0 }
  0xb5   :  { %846 = vmatmul.msk.f32.gmra.mxu2 %vm65_vm0, %v37_v19  ;;  %878 = vmatmul.msk.f32.gmra.mxu3 %vm65_vm0, %v37_v19  ;;  %v198_v21 = vadd.f32 %v197_v20, %v1079_v25 }
  0xb6   :  { %v310_v22 = vpop.f32.mrf.mxu1 }
  0xb7   :  { %638 = vst [vmem:[#allocation2 + $0xc0] sm:$0xff] %v198_v21  ;;  %v311_v23 = vadd.f32 %v310_v22, %v1084_v27  ;;  %782 = vmatmul.msk.f32.gmra.mxu0 %vm65_vm0, %v37_v19  ;;  %v44_v22 = vld [vmem:[%s1330_s0 + $0xe8] sm:$0xff] }
  0xb8   :  { %v423_v24 = vpop.f32.mrf.mxu2  ;;  %v536_v26 = vpop.f32.mrf.mxu3 }
  0xb9   :  { %639 = vst [vmem:[#allocation2 + $0xc8] sm:$0xff] %v311_v23  ;;  %v424_v28 = vadd.f32 %v423_v24, %v1089_v30  ;;  %v537_v29 = vadd.f32 %v536_v26, %v1091_v31  ;;  %814 = vmatmul.msk.f32.gmra.mxu1 %vm65_vm0, %v37_v19 }
  0xbb   :  { %640 = vst [vmem:[#allocation2 + $0xd0] sm:$0xff] %v424_v28 }
  0xbc   :  { %641 = vst [vmem:[#allocation2 + $0xd8] sm:$0xff] %v537_v29  ;;  %v200_v33 = vpop.f32.mrf.mxu0 }
  0xbd   :  { %847 = vmatmul.msk.f32.gmra.mxu2 %vm65_vm0, %v38_v32  ;;  %879 = vmatmul.msk.f32.gmra.mxu3 %vm65_vm0, %v38_v32  ;;  %v201_v34 = vadd.f32 %v200_v33, %v1079_v25 }
  0xbe   :  { %v313_v35 = vpop.f32.mrf.mxu1 }
  0xbf   :  { %642 = vst [vmem:[#allocation2 + $0xe0] sm:$0xff] %v201_v34  ;;  %v314_v36 = vadd.f32 %v313_v35, %v1084_v27  ;;  %783 = vmatmul.msk.f32.gmra.mxu0 %vm65_vm0, %v38_v32  ;;  %v45_v35 = vld [vmem:[%s1330_s0 + $0xf0] sm:$0xff] }
  0xc0   :  { %v426_v37 = vpop.f32.mrf.mxu2  ;;  %v539_v38 = vpop.f32.mrf.mxu3 }
  0xc1   :  { %643 = vst [vmem:[#allocation2 + $0xe8] sm:$0xff] %v314_v36  ;;  %v427_v39 = vadd.f32 %v426_v37, %v1089_v30  ;;  %v540_v40 = vadd.f32 %v539_v38, %v1091_v31  ;;  %815 = vmatmul.msk.f32.gmra.mxu1 %vm65_vm0, %v38_v32 }
  0xc3   :  { %644 = vst [vmem:[#allocation2 + $0xf0] sm:$0xff] %v427_v39 }
  0xc4   :  { %645 = vst [vmem:[#allocation2 + $0xf8] sm:$0xff] %v540_v40  ;;  %v203_v42 = vpop.f32.mrf.mxu0 }
  0xc5   :  { %848 = vmatmul.msk.f32.gmra.mxu2 %vm65_vm0, %v39_v41  ;;  %880 = vmatmul.msk.f32.gmra.mxu3 %vm65_vm0, %v39_v41  ;;  %v204_v43 = vadd.f32 %v203_v42, %v1079_v25 }
  0xc6   :  { %v316_v44 = vpop.f32.mrf.mxu1 }
  0xc7   :  { %646 = vst [vmem:[#allocation2 + $0x100] sm:$0xff] %v204_v43  ;;  %v317_v45 = vadd.f32 %v316_v44, %v1084_v27  ;;  %784 = vmatmul.msk.f32.gmra.mxu0 %vm65_vm0, %v39_v41  ;;  %v46_v44 = vld [vmem:[%s1330_s0 + $0xf8] sm:$0xff]  ;;  %s917_s0 = smov [#allocation2]  }
  0xc8   :  { %v429_v46 = vpop.f32.mrf.mxu2  ;;  %v542_v47 = vpop.f32.mrf.mxu3  ;;  %s746_s8 = sshll.u32 %s917_s0, 4  ;;  %s747_s8 = int_to_ptr.vmem [resolvable:$true] %s746_s8 }
  0xc9   :  { %647 = vst [vmem:[#allocation2 + $0x108] sm:$0xff] %v317_v45  ;;  %v430_v48 = vadd.f32 %v429_v46, %v1089_v30  ;;  %v543_v49 = vadd.f32 %v542_v47, %v1091_v31  ;;  %816 = vmatmul.msk.f32.gmra.mxu1 %vm65_vm0, %v39_v41 }
  0xcb   :  { %648 = vst [vmem:[#allocation2 + $0x110] sm:$0xff] %v430_v48 }
  0xcc   :  { %649 = vst [vmem:[#allocation2 + $0x118] sm:$0xff] %v543_v49  ;;  %v206_v51 = vpop.f32.mrf.mxu0 }
  0xcd   :  { %849 = vmatmul.msk.f32.gmra.mxu2 %vm65_vm0, %v40_v50  ;;  %881 = vmatmul.msk.f32.gmra.mxu3 %vm65_vm0, %v40_v50  ;;  %v207_v52 = vadd.f32 %v206_v51, %v1079_v25 }
  0xce   :  { %v319_v53 = vpop.f32.mrf.mxu1 }
  0xcf   :  { %650 = vst [vmem:[#allocation2 + $0x120] sm:$0xff] %v207_v52  ;;  %v320_v54 = vadd.f32 %v319_v53, %v1084_v27  ;;  %785 = vmatmul.msk.f32.gmra.mxu0 %vm65_vm0, %v40_v50 }
  0xd0   :  { %v432_v55 = vpop.f32.mrf.mxu2  ;;  %v545_v56 = vpop.f32.mrf.mxu3 }
  0xd1   :  { %651 = vst [vmem:[#allocation2 + $0x128] sm:$0xff] %v320_v54  ;;  %v433_v57 = vadd.f32 %v432_v55, %v1089_v30  ;;  %v546_v58 = vadd.f32 %v545_v56, %v1091_v31  ;;  %817 = vmatmul.msk.f32.gmra.mxu1 %vm65_vm0, %v40_v50 }
  0xd3   :  { %652 = vst [vmem:[#allocation2 + $0x130] sm:$0xff] %v433_v57 }
  0xd4   :  { %653 = vst [vmem:[#allocation2 + $0x138] sm:$0xff] %v546_v58  ;;  %v209_v60 = vpop.f32.mrf.mxu0 }
  0xd5   :  { %850 = vmatmul.msk.f32.gmra.mxu2 %vm65_vm0, %v41_v59  ;;  %882 = vmatmul.msk.f32.gmra.mxu3 %vm65_vm0, %v41_v59  ;;  %v210_v61 = vadd.f32 %v209_v60, %v1079_v25 }
  0xd6   :  { %v322_v62 = vpop.f32.mrf.mxu1 }
  0xd7   :  { %654 = vst [vmem:[#allocation2 + $0x140] sm:$0xff] %v210_v61  ;;  %v323_v63 = vadd.f32 %v322_v62, %v1084_v27  ;;  %786 = vmatmul.msk.f32.gmra.mxu0 %vm65_vm0, %v41_v59 }
  0xd8   :  { %v435_v0 = vpop.f32.mrf.mxu2  ;;  %v548_v1 = vpop.f32.mrf.mxu3 }
  0xd9   :  { %655 = vst [vmem:[#allocation2 + $0x148] sm:$0xff] %v323_v63  ;;  %v436_v2 = vadd.f32 %v435_v0, %v1089_v30  ;;  %v549_v3 = vadd.f32 %v548_v1, %v1091_v31  ;;  %818 = vmatmul.msk.f32.gmra.mxu1 %vm65_vm0, %v41_v59 }
  0xdb   :  { %656 = vst [vmem:[#allocation2 + $0x150] sm:$0xff] %v436_v2 }
  0xdc   :  { %657 = vst [vmem:[#allocation2 + $0x158] sm:$0xff] %v549_v3  ;;  %v212_v5 = vpop.f32.mrf.mxu0 }
  0xdd   :  { %851 = vmatmul.msk.f32.gmra.mxu2 %vm65_vm0, %v42_v4  ;;  %883 = vmatmul.msk.f32.gmra.mxu3 %vm65_vm0, %v42_v4  ;;  %v213_v6 = vadd.f32 %v212_v5, %v1079_v25 }
  0xde   :  { %v325_v7 = vpop.f32.mrf.mxu1 }
  0xdf   :  { %658 = vst [vmem:[#allocation2 + $0x160] sm:$0xff] %v213_v6  ;;  %v326_v8 = vadd.f32 %v325_v7, %v1084_v27  ;;  %787 = vmatmul.msk.f32.gmra.mxu0 %vm65_vm0, %v42_v4 }
  0xe0   :  { %v438_v9 = vpop.f32.mrf.mxu2  ;;  %v551_v10 = vpop.f32.mrf.mxu3 }
  0xe1   :  { %659 = vst [vmem:[#allocation2 + $0x168] sm:$0xff] %v326_v8  ;;  %v439_v11 = vadd.f32 %v438_v9, %v1089_v30  ;;  %v552_v12 = vadd.f32 %v551_v10, %v1091_v31  ;;  %819 = vmatmul.msk.f32.gmra.mxu1 %vm65_vm0, %v42_v4 }
  0xe3   :  { %660 = vst [vmem:[#allocation2 + $0x170] sm:$0xff] %v439_v11 }
  0xe4   :  { %661 = vst [vmem:[#allocation2 + $0x178] sm:$0xff] %v552_v12  ;;  %v215_v14 = vpop.f32.mrf.mxu0 }
  0xe5   :  { %852 = vmatmul.msk.f32.gmra.mxu2 %vm65_vm0, %v43_v13  ;;  %884 = vmatmul.msk.f32.gmra.mxu3 %vm65_vm0, %v43_v13  ;;  %v216_v15 = vadd.f32 %v215_v14, %v1079_v25 }
  0xe6   :  { %v328_v16 = vpop.f32.mrf.mxu1 }
  0xe7   :  { %662 = vst [vmem:[#allocation2 + $0x180] sm:$0xff] %v216_v15  ;;  %v329_v17 = vadd.f32 %v328_v16, %v1084_v27  ;;  %788 = vmatmul.msk.f32.gmra.mxu0 %vm65_vm0, %v43_v13 }
  0xe8   :  { %v441_v18 = vpop.f32.mrf.mxu2  ;;  %v554_v19 = vpop.f32.mrf.mxu3 }
  0xe9   :  { %663 = vst [vmem:[#allocation2 + $0x188] sm:$0xff] %v329_v17  ;;  %v442_v20 = vadd.f32 %v441_v18, %v1089_v30  ;;  %v555_v21 = vadd.f32 %v554_v19, %v1091_v31  ;;  %820 = vmatmul.msk.f32.gmra.mxu1 %vm65_vm0, %v43_v13 }
  0xeb   :  { %664 = vst [vmem:[#allocation2 + $0x190] sm:$0xff] %v442_v20 }
  0xec   :  { %665 = vst [vmem:[#allocation2 + $0x198] sm:$0xff] %v555_v21  ;;  %v218_v23 = vpop.f32.mrf.mxu0 }
  0xed   :  { %853 = vmatmul.msk.f32.gmra.mxu2 %vm65_vm0, %v44_v22  ;;  %885 = vmatmul.msk.f32.gmra.mxu3 %vm65_vm0, %v44_v22  ;;  %v219_v24 = vadd.f32 %v218_v23, %v1079_v25 }
  0xee   :  { %v331_v26 = vpop.f32.mrf.mxu1 }
  0xef   :  { %666 = vst [vmem:[#allocation2 + $0x1a0] sm:$0xff] %v219_v24  ;;  %v332_v28 = vadd.f32 %v331_v26, %v1084_v27  ;;  %789 = vmatmul.msk.f32.gmra.mxu0 %vm65_vm0, %v44_v22 }
  0xf0   :  { %v444_v29 = vpop.f32.mrf.mxu2  ;;  %v557_v32 = vpop.f32.mrf.mxu3 }
  0xf1   :  { %667 = vst [vmem:[#allocation2 + $0x1a8] sm:$0xff] %v332_v28  ;;  %v445_v33 = vadd.f32 %v444_v29, %v1089_v30  ;;  %v558_v34 = vadd.f32 %v557_v32, %v1091_v31  ;;  %821 = vmatmul.msk.f32.gmra.mxu1 %vm65_vm0, %v44_v22 }
  0xf3   :  { %668 = vst [vmem:[#allocation2 + $0x1b0] sm:$0xff] %v445_v33 }
  0xf4   :  { %669 = vst [vmem:[#allocation2 + $0x1b8] sm:$0xff] %v558_v34  ;;  %v221_v36 = vpop.f32.mrf.mxu0 }
  0xf5   :  { %854 = vmatmul.msk.f32.gmra.mxu2 %vm65_vm0, %v45_v35  ;;  %886 = vmatmul.msk.f32.gmra.mxu3 %vm65_vm0, %v45_v35  ;;  %v222_v37 = vadd.f32 %v221_v36, %v1079_v25 }
  0xf6   :  { %v334_v38 = vpop.f32.mrf.mxu1 }
  0xf7   :  { %670 = vst [vmem:[#allocation2 + $0x1c0] sm:$0xff] %v222_v37  ;;  %v335_v39 = vadd.f32 %v334_v38, %v1084_v27  ;;  %790 = vmatmul.msk.f32.gmra.mxu0 %vm65_vm0, %v45_v35 }
  0xf8   :  { %v447_v40 = vpop.f32.mrf.mxu2  ;;  %v560_v41 = vpop.f32.mrf.mxu3 }
  0xf9   :  { %671 = vst [vmem:[#allocation2 + $0x1c8] sm:$0xff] %v335_v39  ;;  %v448_v42 = vadd.f32 %v447_v40, %v1089_v30  ;;  %v561_v43 = vadd.f32 %v560_v41, %v1091_v31  ;;  %822 = vmatmul.msk.f32.gmra.mxu1 %vm65_vm0, %v45_v35 }
  0xfb   :  { %672 = vst [vmem:[#allocation2 + $0x1d0] sm:$0xff] %v448_v42 }
  0xfc   :  { %673 = vst [vmem:[#allocation2 + $0x1d8] sm:$0xff] %v561_v43  ;;  %v224_v45 = vpop.f32.mrf.mxu0 }
  0xfd   :  { %855 = vmatmul.msk.f32.gmra.mxu2 %vm65_vm0, %v46_v44  ;;  %887 = vmatmul.msk.f32.gmra.mxu3 %vm65_vm0, %v46_v44  ;;  %v225_v46 = vadd.f32 %v224_v45, %v1079_v25 }
  0xfe   :  { %v337_v47 = vpop.f32.mrf.mxu1 }
  0xff   :  { %674 = vst [vmem:[#allocation2 + $0x1e0] sm:$0xff] %v225_v46  ;;  %v338_v48 = vadd.f32 %v337_v47, %v1084_v27  ;;  %791 = vmatmul.msk.f32.gmra.mxu0 %vm65_vm0, %v46_v44 }
 0x100   :  { %v450_v49 = vpop.f32.mrf.mxu2  ;;  %v563_v50 = vpop.f32.mrf.mxu3 }
 0x101   :  { %675 = vst [vmem:[#allocation2 + $0x1e8] sm:$0xff] %v338_v48  ;;  %v451_v51 = vadd.f32 %v450_v49, %v1089_v30  ;;  %v564_v52 = vadd.f32 %v563_v50, %v1091_v31  ;;  %823 = vmatmul.msk.f32.gmra.mxu1 %vm65_vm0, %v46_v44 }
 0x103   :  { %676 = vst [vmem:[#allocation2 + $0x1f0] sm:$0xff] %v451_v51 }
 0x104   :  { %677 = vst [vmem:[#allocation2 + $0x1f8] sm:$0xff] %v564_v52  ;;  %v227_v53 = vpop.f32.mrf.mxu0 }
 0x105   :  { %v228_v54 = vadd.f32 %v227_v53, %v1079_v25 }
 0x106   :  { %v340_v55 = vpop.f32.mrf.mxu1 }
 0x107   :  { %678 = vst [vmem:[#allocation2 + $0x200] sm:$0xff] %v228_v54  ;;  %v341_v56 = vadd.f32 %v340_v55, %v1084_v27 }
 0x108   :  { %v453_v57 = vpop.f32.mrf.mxu2  ;;  %v566_v58 = vpop.f32.mrf.mxu3 }
 0x109   :  { %679 = vst [vmem:[#allocation2 + $0x208] sm:$0xff] %v341_v56  ;;  %v454_v59 = vadd.f32 %v453_v57, %v1089_v30  ;;  %v567_v60 = vadd.f32 %v566_v58, %v1091_v31 }
 0x10b   :  { %680 = vst [vmem:[#allocation2 + $0x210] sm:$0xff] %v454_v59 }
 0x10c   :  { %681 = vst [vmem:[#allocation2 + $0x218] sm:$0xff] %v567_v60  ;;  %v230_v61 = vpop.f32.mrf.mxu0 }
 0x10d   :  { %v231_v62 = vadd.f32 %v230_v61, %v1079_v25 }
 0x10e   :  { %v343_v63 = vpop.f32.mrf.mxu1 }
 0x10f   :  { %682 = vst [vmem:[#allocation2 + $0x220] sm:$0xff] %v231_v62  ;;  %v344_v0 = vadd.f32 %v343_v63, %v1084_v27 }
 0x110   :  { %v456_v1 = vpop.f32.mrf.mxu2  ;;  %v569_v2 = vpop.f32.mrf.mxu3 }
 0x111   :  { %683 = vst [vmem:[#allocation2 + $0x228] sm:$0xff] %v344_v0  ;;  %v457_v3 = vadd.f32 %v456_v1, %v1089_v30  ;;  %v570_v4 = vadd.f32 %v569_v2, %v1091_v31 }
 0x113   :  { %684 = vst [vmem:[#allocation2 + $0x230] sm:$0xff] %v457_v3 }
 0x114   :  { %685 = vst [vmem:[#allocation2 + $0x238] sm:$0xff] %v570_v4  ;;  %v233_v5 = vpop.f32.mrf.mxu0 }
 0x115   :  { %v234_v6 = vadd.f32 %v233_v5, %v1079_v25 }
 0x116   :  { %v346_v7 = vpop.f32.mrf.mxu1 }
 0x117   :  { %686 = vst [vmem:[#allocation2 + $0x240] sm:$0xff] %v234_v6  ;;  %v347_v8 = vadd.f32 %v346_v7, %v1084_v27 }
 0x118   :  { %v459_v9 = vpop.f32.mrf.mxu2  ;;  %v572_v10 = vpop.f32.mrf.mxu3 }
 0x119   :  { %687 = vst [vmem:[#allocation2 + $0x248] sm:$0xff] %v347_v8  ;;  %v460_v11 = vadd.f32 %v459_v9, %v1089_v30  ;;  %v573_v12 = vadd.f32 %v572_v10, %v1091_v31 }
 0x11b   :  { %688 = vst [vmem:[#allocation2 + $0x250] sm:$0xff] %v460_v11 }
 0x11c   :  { %689 = vst [vmem:[#allocation2 + $0x258] sm:$0xff] %v573_v12  ;;  %v236_v13 = vpop.f32.mrf.mxu0 }
 0x11d   :  { %v237_v14 = vadd.f32 %v236_v13, %v1079_v25 }
 0x11e   :  { %v349_v15 = vpop.f32.mrf.mxu1 }
 0x11f   :  { %690 = vst [vmem:[#allocation2 + $0x260] sm:$0xff] %v237_v14  ;;  %v350_v16 = vadd.f32 %v349_v15, %v1084_v27 }
 0x120   :  { %v462_v17 = vpop.f32.mrf.mxu2  ;;  %v575_v18 = vpop.f32.mrf.mxu3 }
 0x121   :  { %691 = vst [vmem:[#allocation2 + $0x268] sm:$0xff] %v350_v16  ;;  %v463_v19 = vadd.f32 %v462_v17, %v1089_v30  ;;  %v576_v20 = vadd.f32 %v575_v18, %v1091_v31 }
 0x123   :  { %692 = vst [vmem:[#allocation2 + $0x270] sm:$0xff] %v463_v19 }
 0x124   :  { %693 = vst [vmem:[#allocation2 + $0x278] sm:$0xff] %v576_v20  ;;  %v239_v21 = vpop.f32.mrf.mxu0 }
 0x125   :  { %v240_v22 = vadd.f32 %v239_v21, %v1079_v25 }
 0x126   :  { %v352_v23 = vpop.f32.mrf.mxu1 }
 0x127   :  { %694 = vst [vmem:[#allocation2 + $0x280] sm:$0xff] %v240_v22  ;;  %v353_v24 = vadd.f32 %v352_v23, %v1084_v27 }
 0x128   :  { %v465_v26 = vpop.f32.mrf.mxu2  ;;  %v578_v28 = vpop.f32.mrf.mxu3 }
 0x129   :  { %695 = vst [vmem:[#allocation2 + $0x288] sm:$0xff] %v353_v24  ;;  %v466_v29 = vadd.f32 %v465_v26, %v1089_v30  ;;  %v579_v32 = vadd.f32 %v578_v28, %v1091_v31 }
 0x12b   :  { %696 = vst [vmem:[#allocation2 + $0x290] sm:$0xff] %v466_v29 }
 0x12c   :  { %697 = vst [vmem:[#allocation2 + $0x298] sm:$0xff] %v579_v32  ;;  %v242_v33 = vpop.f32.mrf.mxu0 }
 0x12d   :  { %v243_v34 = vadd.f32 %v242_v33, %v1079_v25 }
 0x12e   :  { %v355_v35 = vpop.f32.mrf.mxu1 }
 0x12f   :  { %698 = vst [vmem:[#allocation2 + $0x2a0] sm:$0xff] %v243_v34  ;;  %v356_v36 = vadd.f32 %v355_v35, %v1084_v27 }
 0x130   :  { %v468_v37 = vpop.f32.mrf.mxu2  ;;  %v581_v38 = vpop.f32.mrf.mxu3 }
 0x131   :  { %699 = vst [vmem:[#allocation2 + $0x2a8] sm:$0xff] %v356_v36  ;;  %v469_v39 = vadd.f32 %v468_v37, %v1089_v30  ;;  %v582_v40 = vadd.f32 %v581_v38, %v1091_v31 }
 0x133   :  { %700 = vst [vmem:[#allocation2 + $0x2b0] sm:$0xff] %v469_v39 }
 0x134   :  { %701 = vst [vmem:[#allocation2 + $0x2b8] sm:$0xff] %v582_v40  ;;  %v245_v41 = vpop.f32.mrf.mxu0 }
 0x135   :  { %v246_v42 = vadd.f32 %v245_v41, %v1079_v25 }
 0x136   :  { %v358_v43 = vpop.f32.mrf.mxu1 }
 0x137   :  { %702 = vst [vmem:[#allocation2 + $0x2c0] sm:$0xff] %v246_v42  ;;  %v359_v44 = vadd.f32 %v358_v43, %v1084_v27 }
 0x138   :  { %v471_v45 = vpop.f32.mrf.mxu2  ;;  %v584_v46 = vpop.f32.mrf.mxu3 }
 0x139   :  { %703 = vst [vmem:[#allocation2 + $0x2c8] sm:$0xff] %v359_v44  ;;  %v472_v47 = vadd.f32 %v471_v45, %v1089_v30  ;;  %v585_v48 = vadd.f32 %v584_v46, %v1091_v31 }
 0x13b   :  { %704 = vst [vmem:[#allocation2 + $0x2d0] sm:$0xff] %v472_v47 }
 0x13c   :  { %705 = vst [vmem:[#allocation2 + $0x2d8] sm:$0xff] %v585_v48  ;;  %v248_v49 = vpop.f32.mrf.mxu0 }
 0x13d   :  { %v249_v50 = vadd.f32 %v248_v49, %v1079_v25 }
 0x13e   :  { %v361_v51 = vpop.f32.mrf.mxu1 }
 0x13f   :  { %706 = vst [vmem:[#allocation2 + $0x2e0] sm:$0xff] %v249_v50  ;;  %v362_v52 = vadd.f32 %v361_v51, %v1084_v27 }
 0x140   :  { %v474_v53 = vpop.f32.mrf.mxu2  ;;  %v587_v54 = vpop.f32.mrf.mxu3 }
 0x141   :  { %707 = vst [vmem:[#allocation2 + $0x2e8] sm:$0xff] %v362_v52  ;;  %v475_v55 = vadd.f32 %v474_v53, %v1089_v30  ;;  %v588_v56 = vadd.f32 %v587_v54, %v1091_v31 }
 0x143   :  { %708 = vst [vmem:[#allocation2 + $0x2f0] sm:$0xff] %v475_v55 }
 0x144   :  { %709 = vst [vmem:[#allocation2 + $0x2f8] sm:$0xff] %v588_v56  ;;  %v251_v57 = vpop.f32.mrf.mxu0 }
 0x145   :  { %v252_v58 = vadd.f32 %v251_v57, %v1079_v25 }
 0x146   :  { %v364_v59 = vpop.f32.mrf.mxu1 }
 0x147   :  { %710 = vst [vmem:[#allocation2 + $0x300] sm:$0xff] %v252_v58  ;;  %v365_v60 = vadd.f32 %v364_v59, %v1084_v27 }
 0x148   :  { %v477_v61 = vpop.f32.mrf.mxu2  ;;  %v590_v62 = vpop.f32.mrf.mxu3 }
 0x149   :  { %711 = vst [vmem:[#allocation2 + $0x308] sm:$0xff] %v365_v60  ;;  %v478_v63 = vadd.f32 %v477_v61, %v1089_v30  ;;  %v591_v0 = vadd.f32 %v590_v62, %v1091_v31 }
 0x14b   :  { %712 = vst [vmem:[#allocation2 + $0x310] sm:$0xff] %v478_v63 }
 0x14c   :  { %713 = vst [vmem:[#allocation2 + $0x318] sm:$0xff] %v591_v0  ;;  %v254_v1 = vpop.f32.mrf.mxu0 }
 0x14d   :  { %v255_v2 = vadd.f32 %v254_v1, %v1079_v25 }
 0x14e   :  { %v367_v3 = vpop.f32.mrf.mxu1 }
 0x14f   :  { %714 = vst [vmem:[#allocation2 + $0x320] sm:$0xff] %v255_v2  ;;  %v368_v4 = vadd.f32 %v367_v3, %v1084_v27 }
 0x150   :  { %v480_v5 = vpop.f32.mrf.mxu2  ;;  %v593_v6 = vpop.f32.mrf.mxu3 }
 0x151   :  { %715 = vst [vmem:[#allocation2 + $0x328] sm:$0xff] %v368_v4  ;;  %v481_v7 = vadd.f32 %v480_v5, %v1089_v30  ;;  %v594_v8 = vadd.f32 %v593_v6, %v1091_v31 }
 0x153   :  { %716 = vst [vmem:[#allocation2 + $0x330] sm:$0xff] %v481_v7 }
 0x154   :  { %717 = vst [vmem:[#allocation2 + $0x338] sm:$0xff] %v594_v8  ;;  %v257_v9 = vpop.f32.mrf.mxu0 }
 0x155   :  { %v258_v10 = vadd.f32 %v257_v9, %v1079_v25 }
 0x156   :  { %v370_v11 = vpop.f32.mrf.mxu1 }
 0x157   :  { %718 = vst [vmem:[#allocation2 + $0x340] sm:$0xff] %v258_v10  ;;  %v371_v12 = vadd.f32 %v370_v11, %v1084_v27 }
 0x158   :  { %v483_v13 = vpop.f32.mrf.mxu2  ;;  %v596_v14 = vpop.f32.mrf.mxu3 }
 0x159   :  { %719 = vst [vmem:[#allocation2 + $0x348] sm:$0xff] %v371_v12  ;;  %v484_v15 = vadd.f32 %v483_v13, %v1089_v30  ;;  %v597_v16 = vadd.f32 %v596_v14, %v1091_v31 }
 0x15b   :  { %720 = vst [vmem:[#allocation2 + $0x350] sm:$0xff] %v484_v15 }
 0x15c   :  { %721 = vst [vmem:[#allocation2 + $0x358] sm:$0xff] %v597_v16  ;;  %v260_v17 = vpop.f32.mrf.mxu0 }
 0x15d   :  { %v261_v18 = vadd.f32 %v260_v17, %v1079_v25 }
 0x15e   :  { %v373_v19 = vpop.f32.mrf.mxu1 }
 0x15f   :  { %722 = vst [vmem:[#allocation2 + $0x360] sm:$0xff] %v261_v18  ;;  %v374_v20 = vadd.f32 %v373_v19, %v1084_v27 }
 0x160   :  { %v486_v21 = vpop.f32.mrf.mxu2  ;;  %v599_v22 = vpop.f32.mrf.mxu3 }
 0x161   :  { %723 = vst [vmem:[#allocation2 + $0x368] sm:$0xff] %v374_v20  ;;  %v487_v23 = vadd.f32 %v486_v21, %v1089_v30  ;;  %v600_v24 = vadd.f32 %v599_v22, %v1091_v31 }
 0x163   :  { %724 = vst [vmem:[#allocation2 + $0x370] sm:$0xff] %v487_v23 }
 0x164   :  { %725 = vst [vmem:[#allocation2 + $0x378] sm:$0xff] %v600_v24  ;;  %v263_v26 = vpop.f32.mrf.mxu0 }
 0x165   :  { %v264_v28 = vadd.f32 %v263_v26, %v1079_v25 }
 0x166   :  { %v376_v29 = vpop.f32.mrf.mxu1 }
 0x167   :  { %726 = vst [vmem:[#allocation2 + $0x380] sm:$0xff] %v264_v28  ;;  %v377_v32 = vadd.f32 %v376_v29, %v1084_v27 }
 0x168   :  { %v489_v33 = vpop.f32.mrf.mxu2  ;;  %v602_v34 = vpop.f32.mrf.mxu3 }
 0x169   :  { %727 = vst [vmem:[#allocation2 + $0x388] sm:$0xff] %v377_v32  ;;  %v490_v35 = vadd.f32 %v489_v33, %v1089_v30  ;;  %v603_v36 = vadd.f32 %v602_v34, %v1091_v31 }
 0x16b   :  { %728 = vst [vmem:[#allocation2 + $0x390] sm:$0xff] %v490_v35 }
 0x16c   :  { %729 = vst [vmem:[#allocation2 + $0x398] sm:$0xff] %v603_v36  ;;  %v266_v37 = vpop.f32.mrf.mxu0 }
 0x16d   :  { %v267_v38 = vadd.f32 %v266_v37, %v1079_v25 }
 0x16e   :  { %v379_v39 = vpop.f32.mrf.mxu1 }
 0x16f   :  { %730 = vst [vmem:[#allocation2 + $0x3a0] sm:$0xff] %v267_v38  ;;  %v380_v40 = vadd.f32 %v379_v39, %v1084_v27 }
 0x170   :  { %v492_v41 = vpop.f32.mrf.mxu2  ;;  %v605_v42 = vpop.f32.mrf.mxu3 }
 0x171   :  { %731 = vst [vmem:[#allocation2 + $0x3a8] sm:$0xff] %v380_v40  ;;  %v493_v43 = vadd.f32 %v492_v41, %v1089_v30  ;;  %v606_v44 = vadd.f32 %v605_v42, %v1091_v31 }
 0x173   :  { %732 = vst [vmem:[#allocation2 + $0x3b0] sm:$0xff] %v493_v43 }
 0x174   :  { %733 = vst [vmem:[#allocation2 + $0x3b8] sm:$0xff] %v606_v44  ;;  %v269_v45 = vpop.f32.mrf.mxu0 }
 0x175   :  { %v270_v46 = vadd.f32 %v269_v45, %v1079_v25 }
 0x176   :  { %v382_v47 = vpop.f32.mrf.mxu1 }
 0x177   :  { %734 = vst [vmem:[#allocation2 + $0x3c0] sm:$0xff] %v270_v46  ;;  %v383_v48 = vadd.f32 %v382_v47, %v1084_v27 }
 0x178   :  { %v495_v49 = vpop.f32.mrf.mxu2  ;;  %v608_v50 = vpop.f32.mrf.mxu3 }
 0x179   :  { %735 = vst [vmem:[#allocation2 + $0x3c8] sm:$0xff] %v383_v48  ;;  %v496_v51 = vadd.f32 %v495_v49, %v1089_v30  ;;  %v609_v52 = vadd.f32 %v608_v50, %v1091_v31 }
 0x17b   :  { %736 = vst [vmem:[#allocation2 + $0x3d0] sm:$0xff] %v496_v51 }
 0x17c   :  { %737 = vst [vmem:[#allocation2 + $0x3d8] sm:$0xff] %v609_v52  ;;  %v272_v53 = vpop.f32.mrf.mxu0 }
 0x17d   :  { %v273_v54 = vadd.f32 %v272_v53, %v1079_v25 }
 0x17e   :  { %v385_v55 = vpop.f32.mrf.mxu1 }
 0x17f   :  { %738 = vst [vmem:[#allocation2 + $0x3e0] sm:$0xff] %v273_v54  ;;  %v386_v56 = vadd.f32 %v385_v55, %v1084_v27 }
 0x180   :  { %v498_v57 = vpop.f32.mrf.mxu2  ;;  %v611_v58 = vpop.f32.mrf.mxu3 }
 0x181   :  { %739 = vst [vmem:[#allocation2 + $0x3e8] sm:$0xff] %v386_v56  ;;  %v499_v59 = vadd.f32 %v498_v57, %v1089_v30  ;;  %v612_v60 = vadd.f32 %v611_v58, %v1091_v31 }
 0x183   :  { %740 = vst [vmem:[#allocation2 + $0x3f0] sm:$0xff] %v499_v59 }
 0x184   :  { %741 = vst [vmem:[#allocation2 + $0x3f8] sm:$0xff] %v612_v60 }
 0x185   :  { %754 = dma.vmem_to_hbm [thread:$0]  %s747_s8, 16384, %s749_s11, [#allocation3], %s918_s12, %s918_s12, %s919_s13  }
 0x186   :  { %915 = dma.done.wait [#allocation3], 16384  }
 0x187   :  { %916 = vsyncadd [#allocation3], 4294950912 }
 0x188   :  { %759 = vsyncpa [#allocation3], 1 }

</bundles_post_ra>
